<compile_context>
chip_gen: v5e
topology: v5e:2x2
jax: 0.10.0
libtpu: 0.0.40
codegen_flags: <defaults>
</compile_context>

<pallas_src>
import jax
import jax.numpy as jnp
from jax.experimental import pallas as pl
from jax.experimental.pallas import tpu as pltpu

N_TORCH_LAYERS = 6   # Linear layers in the PyTorch module
N_CHAIN = 5          # folded chain: 6->8, 8->4, 4->4 (folded), 4->8, 8->6
CHAIN = 32           # packed chain width (30 live rows/cols, padded to 32)
ACT_PAD = 8          # lane width of x / out in HBM (>= input_dim=6)


def _autoencoder_kernel(x_ref, w_ref, b_ref, out_ref):
    w = w_ref[...]                               # (32, 32) bf16 chained block-diag weights
    b = b_ref[...]                               # (8, 32)  f32, row i = layer-i bias
    x = x_ref[...].astype(jnp.bfloat16)          # (tile_b, 8)

    # Layer 0 (6->8): x has only 8 lanes, so only the first 8 chain rows can
    # contribute (rows 6..7 belong to layer 1, but x[:, 6:8] == 0).
    h = jnp.dot(x, w[:ACT_PAD, :], preferred_element_type=jnp.float32)
    h = jnp.maximum(h + b[0:1, :], 0.0)

    # Layers 1..4 of the folded chain, all against the same resident 32x32 tile.
    for i in range(1, N_CHAIN):
        h = jnp.dot(h.astype(jnp.bfloat16), w, preferred_element_type=jnp.float32)
        h = h + b[i:i + 1, :]
        if i < N_CHAIN - 1:                      # ReLU after every folded layer but the last
            h = jnp.maximum(h, 0.0)

    # Final layer wrote columns 0..5; columns 6..7 are identically zero.
    out_ref[...] = h[:, :ACT_PAD].astype(out_ref.dtype)


def init_params(key, input_dim=6, hidden_dims=(8, 4), latent_dim=2):
    """Deterministic PyTorch-style init. Weights stored as (in, out)."""
    enc_dims = [input_dim] + list(hidden_dims) + [latent_dim]
    dec_dims = [latent_dim] + list(reversed(hidden_dims)) + [input_dim]
    dim_pairs = list(zip(enc_dims[:-1], enc_dims[1:])) + \
                list(zip(dec_dims[:-1], dec_dims[1:]))
    params = []
    for din, dout in dim_pairs:
        key, kw, kb = jax.random.split(key, 3)
        bound = 1.0 / float(jnp.sqrt(float(din)))
        w = jax.random.uniform(kw, (din, dout), minval=-bound, maxval=bound,
                               dtype=jnp.float32)
        b = jax.random.uniform(kb, (dout,), minval=-bound, maxval=bound,
                               dtype=jnp.float32)
        params.append((w, b))
    return params


def fold_params(params):
    """Fold latent (4->2) and first decoder (2->4) layers (no activation between)."""
    assert len(params) == N_TORCH_LAYERS
    (w2, b2), (w3, b3) = params[2], params[3]
    w23 = w2 @ w3                  # (4, 4)
    b23 = b2 @ w3 + b3             # (4,)
    return [params[0], params[1], (w23, b23), params[4], params[5]]


def pack_params(params):
    """Pack the folded 5-layer chain into one 32x32 bf16 weight tile plus one
    (8, 32) f32 bias array (row i = layer i)."""
    if len(params) == N_TORCH_LAYERS:
        params = fold_params(params)
    assert len(params) == N_CHAIN
    dims = [(int(w.shape[0]), int(w.shape[1])) for w, _ in params]
    row_off = [0]
    for din, _ in dims[:-1]:
        row_off.append(row_off[-1] + din)
    col_off = row_off[1:] + [0]          # chained; last layer writes back to lane 0
    assert row_off[-1] + dims[-1][0] <= CHAIN, "chain exceeds packed tile width"
    assert dims[0][0] <= ACT_PAD and dims[-1][1] <= ACT_PAD

    # The zero-lane invariant requires every layer's output band to be disjoint.
    bands = [(c, c + dout) for c, (_, dout) in zip(col_off, dims)]
    for a in range(len(bands)):
        for c in range(a + 1, len(bands)):
            lo1, hi1 = bands[a]
            lo2, hi2 = bands[c]
            assert hi1 <= lo2 or hi2 <= lo1, "output bands overlap"

    w_packed = jnp.zeros((CHAIN, CHAIN), jnp.float32)
    b_packed = jnp.zeros((8, CHAIN), jnp.float32)
    for i, ((w, b), (din, dout)) in enumerate(zip(params, dims)):
        r, c = row_off[i], col_off[i]
        assert c + dout <= CHAIN
        w_packed = w_packed.at[r:r + din, c:c + dout].set(w.astype(jnp.float32))
        b_packed = b_packed.at[i, c:c + dout].set(b.astype(jnp.float32))
    return w_packed.astype(jnp.bfloat16), b_packed


def _round_up(n, m):
    return (n + m - 1) // m * m


def adaptive_autoencoder_forward(x, w_packed, b_packed, tile_b=2048):
    """x: (B, F=6) float32 -> (B, F) reconstruction (eval-mode dropout)."""
    B, F = x.shape
    assert F <= ACT_PAD
    b_min = _round_up(B, 8)
    tile_b = max(8, _round_up(min(tile_b, b_min), 8))
    # v7x: ensure the "parallel" batch axis has >= 2 steps (uses both TCs)
    # whenever the batch allows it.  v5e/v6e single-TC: harmless.
    if b_min > 8 and tile_b >= b_min:
        tile_b = max(8, _round_up(pl.cdiv(b_min, 2), 8))
    b_pad = _round_up(b_min, tile_b)

    # Cheap wrapper pad: 8 lanes (not 128) and batch rounded to the tile.
    x_p = jnp.zeros((b_pad, ACT_PAD), jnp.float32).at[:B, :F].set(x)

    out_p = pl.pallas_call(
        _autoencoder_kernel,
        out_shape=jax.ShapeDtypeStruct((b_pad, ACT_PAD), jnp.float32),
        grid_spec=pltpu.PrefetchScalarGridSpec(
            num_scalar_prefetch=0,
            grid=(b_pad // tile_b,),
            in_specs=[
                pl.BlockSpec((tile_b, ACT_PAD), lambda i: (i, 0)),   # x: streamed
                pl.BlockSpec((CHAIN, CHAIN), lambda i: (0, 0)),      # W: VMEM-resident
                pl.BlockSpec((8, CHAIN), lambda i: (0, 0)),          # b: VMEM-resident
            ],
            out_specs=pl.BlockSpec((tile_b, ACT_PAD), lambda i: (i, 0)),
        ),
        compiler_params=pltpu.CompilerParams(
            dimension_semantics=("parallel",),   # shard batch tiles across TCs on v7x
        ),
    )(x_p, w_packed, b_packed)

    return out_p[:B, :F]


def _reference_forward(x, params):
    """Pure-JAX f32 reference of the original 6-layer module (eval-mode dropout)."""
    h = x
    n = len(params)
    for i, (w, b) in enumerate(params):
        h = h @ w + b
        if i not in (2, n - 1):     # ReLU after every layer except latent & final
            h = jnp.maximum(h, 0.0)
    return h


def _reference_forward_packed(x, w_packed, b_packed):
    """Plain-JAX emulation of the kernel's exact bf16/f32 math (tight check)."""
    B, F = x.shape
    xp = jnp.zeros((B, ACT_PAD), jnp.float32).at[:, :F].set(x)
    h = jnp.dot(xp.astype(jnp.bfloat16), w_packed[:ACT_PAD, :],
                preferred_element_type=jnp.float32)
    h = jnp.maximum(h + b_packed[0:1, :], 0.0)
    for i in range(1, N_CHAIN):
        h = jnp.dot(h.astype(jnp.bfloat16), w_packed,
                    preferred_element_type=jnp.float32) + b_packed[i:i + 1, :]
        if i < N_CHAIN - 1:
            h = jnp.maximum(h, 0.0)
    return h[:, :F]


if __name__ == "__main__":
    key = jax.random.PRNGKey(0)
    k_param, k_x, k_x2 = jax.random.split(key, 3)

    params = init_params(k_param, input_dim=6, hidden_dims=(8, 4), latent_dim=2)
    w_packed, b_packed = pack_params(params)

    # Small batch (single grid step).
    B = 8
    x = jax.random.normal(k_x, (B, 6), dtype=jnp.float32)
    out = adaptive_autoencoder_forward(x, w_packed, b_packed)
    jax.block_until_ready(out)
    assert out.shape == (B, 6)
    # Tight check vs the bf16-emulating reference (same math as the kernel).
    ref_p = _reference_forward_packed(x, w_packed, b_packed)
    assert jnp.allclose(out, ref_p, atol=1e-3, rtol=1e-3), "mismatch vs packed bf16 reference (B=8)"
    # Loose check vs the exact f32 module semantics (bf16 MXU => ~1e-2 abs error).
    ref = _reference_forward(x, params)
    assert jnp.allclose(out, ref, atol=1e-1, rtol=1e-1), "mismatch vs f32 reference (B=8)"

    # Larger, non-divisible batch exercising the multi-step (>=2) batch grid + padding.
    B2 = 200
    x2 = jax.random.normal(k_x2, (B2, 6), dtype=jnp.float32)
    out2 = adaptive_autoencoder_forward(x2, w_packed, b_packed)
    jax.block_until_ready(out2)
    assert out2.shape == (B2, 6)
    ref2_p = _reference_forward_packed(x2, w_packed, b_packed)
    assert jnp.allclose(out2, ref2_p, atol=1e-3, rtol=1e-3), "mismatch vs packed bf16 reference (B=200)"
    ref2 = _reference_forward(x2, params)
    assert jnp.allclose(out2, ref2, atol=1e-1, rtol=1e-1), "mismatch vs f32 reference (B=200)"

    print("KERNEL_OK")
</pallas_src>

<mosaic_0001>
module attributes {stable_mosaic.version = 11 : i64} {
  func.func @_autoencoder_kernel(%arg0: i32, %arg1: memref<8x8xf32, #tpu.memory_space<vmem>>, %arg2: memref<32x32xbf16, #tpu.memory_space<vmem>>, %arg3: memref<8x32xf32, #tpu.memory_space<vmem>>, %arg4: memref<8x8xf32, #tpu.memory_space<vmem>>) attributes {dimension_semantics = [#tpu.dimension_semantics<parallel>], iteration_bounds = array<i64: 1>, scalar_prefetch = 0 : i64, scratch_operands = 0 : i64, tpu.core_type = #tpu.core_type<tc>, window_params = [{transform_indices = @transform_0, window_bounds = array<i64: 8, 8>}, {pipeline_mode = #tpu.pipeline_mode<synchronous>, transform_indices = @transform_1, window_bounds = array<i64: 32, 32>}, {pipeline_mode = #tpu.pipeline_mode<synchronous>, transform_indices = @transform_2, window_bounds = array<i64: 8, 32>}, {transform_indices = @transform_3, window_bounds = array<i64: 8, 8>}]} {
    %c0 = arith.constant 0 : index
    %c0_0 = arith.constant 0 : index
    %0 = vector.load %arg2[%c0, %c0_0] : memref<32x32xbf16, #tpu.memory_space<vmem>>, vector<32x32xbf16>
    %c0_1 = arith.constant 0 : index
    %c0_2 = arith.constant 0 : index
    %1 = vector.load %arg3[%c0_1, %c0_2] : memref<8x32xf32, #tpu.memory_space<vmem>>, vector<8x32xf32>
    %c0_3 = arith.constant 0 : index
    %c0_4 = arith.constant 0 : index
    %2 = vector.load %arg1[%c0_3, %c0_4] : memref<8x8xf32, #tpu.memory_space<vmem>>, vector<8x8xf32>
    %3 = arith.truncf %2 : vector<8x8xf32> to vector<8x8xbf16>
    %4 = vector.extract_strided_slice %0 {offsets = [0, 0], sizes = [8, 32], strides = [1, 1]} : vector<32x32xbf16> to vector<8x32xbf16>
    %cst = arith.constant dense<0.000000e+00> : vector<8x32xf32>
    %5 = tpu.matmul %3, %4, %cst {dimension_numbers = #tpu.dot_dimension_numbers<[1], [0], [0], [1], [0, 0, 1, 1], [], []>} : vector<8x8xbf16>, vector<8x32xbf16>, vector<8x32xf32> -> vector<8x32xf32>
    %6 = vector.extract_strided_slice %1 {offsets = [0, 0], sizes = [1, 32], strides = [1, 1]} : vector<8x32xf32> to vector<1x32xf32>
    %7 = vector.broadcast %6 : vector<1x32xf32> to vector<8x32xf32>
    %8 = arith.addf %5, %7 : vector<8x32xf32>
    %cst_5 = arith.constant 0.000000e+00 : f32
    %9 = vector.broadcast %cst_5 : f32 to vector<8x32xf32>
    %10 = arith.maximumf %8, %9 : vector<8x32xf32>
    %11 = arith.truncf %10 : vector<8x32xf32> to vector<8x32xbf16>
    %cst_6 = arith.constant dense<0.000000e+00> : vector<8x32xf32>
    %12 = tpu.matmul %11, %0, %cst_6 {dimension_numbers = #tpu.dot_dimension_numbers<[1], [0], [0], [1], [0, 0, 1, 1], [], []>} : vector<8x32xbf16>, vector<32x32xbf16>, vector<8x32xf32> -> vector<8x32xf32>
    %13 = vector.extract_strided_slice %1 {offsets = [1, 0], sizes = [1, 32], strides = [1, 1]} : vector<8x32xf32> to vector<1x32xf32>
    %14 = vector.broadcast %13 : vector<1x32xf32> to vector<8x32xf32>
    %15 = arith.addf %12, %14 : vector<8x32xf32>
    %cst_7 = arith.constant 0.000000e+00 : f32
    %16 = vector.broadcast %cst_7 : f32 to vector<8x32xf32>
    %17 = arith.maximumf %15, %16 : vector<8x32xf32>
    %18 = arith.truncf %17 : vector<8x32xf32> to vector<8x32xbf16>
    %cst_8 = arith.constant dense<0.000000e+00> : vector<8x32xf32>
    %19 = tpu.matmul %18, %0, %cst_8 {dimension_numbers = #tpu.dot_dimension_numbers<[1], [0], [0], [1], [0, 0, 1, 1], [], []>} : vector<8x32xbf16>, vector<32x32xbf16>, vector<8x32xf32> -> vector<8x32xf32>
    %20 = vector.extract_strided_slice %1 {offsets = [2, 0], sizes = [1, 32], strides = [1, 1]} : vector<8x32xf32> to vector<1x32xf32>
    %21 = vector.broadcast %20 : vector<1x32xf32> to vector<8x32xf32>
    %22 = arith.addf %19, %21 : vector<8x32xf32>
    %cst_9 = arith.constant 0.000000e+00 : f32
    %23 = vector.broadcast %cst_9 : f32 to vector<8x32xf32>
    %24 = arith.maximumf %22, %23 : vector<8x32xf32>
    %25 = arith.truncf %24 : vector<8x32xf32> to vector<8x32xbf16>
    %cst_10 = arith.constant dense<0.000000e+00> : vector<8x32xf32>
    %26 = tpu.matmul %25, %0, %cst_10 {dimension_numbers = #tpu.dot_dimension_numbers<[1], [0], [0], [1], [0, 0, 1, 1], [], []>} : vector<8x32xbf16>, vector<32x32xbf16>, vector<8x32xf32> -> vector<8x32xf32>
    %27 = vector.extract_strided_slice %1 {offsets = [3, 0], sizes = [1, 32], strides = [1, 1]} : vector<8x32xf32> to vector<1x32xf32>
    %28 = vector.broadcast %27 : vector<1x32xf32> to vector<8x32xf32>
    %29 = arith.addf %26, %28 : vector<8x32xf32>
    %cst_11 = arith.constant 0.000000e+00 : f32
    %30 = vector.broadcast %cst_11 : f32 to vector<8x32xf32>
    %31 = arith.maximumf %29, %30 : vector<8x32xf32>
    %32 = arith.truncf %31 : vector<8x32xf32> to vector<8x32xbf16>
    %cst_12 = arith.constant dense<0.000000e+00> : vector<8x32xf32>
    %33 = tpu.matmul %32, %0, %cst_12 {dimension_numbers = #tpu.dot_dimension_numbers<[1], [0], [0], [1], [0, 0, 1, 1], [], []>} : vector<8x32xbf16>, vector<32x32xbf16>, vector<8x32xf32> -> vector<8x32xf32>
    %34 = vector.extract_strided_slice %1 {offsets = [4, 0], sizes = [1, 32], strides = [1, 1]} : vector<8x32xf32> to vector<1x32xf32>
    %35 = vector.broadcast %34 : vector<1x32xf32> to vector<8x32xf32>
    %36 = arith.addf %33, %35 : vector<8x32xf32>
    %37 = vector.extract_strided_slice %36 {offsets = [0, 0], sizes = [8, 8], strides = [1, 1]} : vector<8x32xf32> to vector<8x8xf32>
    %c0_13 = arith.constant 0 : index
    %c0_14 = arith.constant 0 : index
    %38 = vector.load %arg4[%c0_13, %c0_14] : memref<8x8xf32, #tpu.memory_space<vmem>>, vector<8x8xf32>
    tpu.vector_store %arg4[%c0_13, %c0_14], %37 {strides = array<i32>} : memref<8x8xf32, #tpu.memory_space<vmem>>, vector<8x8xf32>,
    return
  }
  func.func @transform_0(%arg0: i32) -> (i32, i32) {
    %c0_i32 = arith.constant 0 : i32
    %c0_i32_0 = arith.constant 0 : i32
    return %arg0, %c0_i32 : i32, i32
  }
  func.func @transform_1(%arg0: i32) -> (i32, i32) {
    %c0_i32 = arith.constant 0 : i32
    %c0_i32_0 = arith.constant 0 : i32
    %c0_i32_1 = arith.constant 0 : i32
    return %c0_i32, %c0_i32_0 : i32, i32
  }
  func.func @transform_2(%arg0: i32) -> (i32, i32) {
    %c0_i32 = arith.constant 0 : i32
    %c0_i32_0 = arith.constant 0 : i32
    %c0_i32_1 = arith.constant 0 : i32
    return %c0_i32, %c0_i32_0 : i32, i32
  }
  func.func @transform_3(%arg0: i32) -> (i32, i32) {
    %c0_i32 = arith.constant 0 : i32
    %c0_i32_0 = arith.constant 0 : i32
    return %arg0, %c0_i32 : i32, i32
  }
}

</mosaic_0001>

<bundles_post_ra>
// kernel: tpu_custom_call.1
= control target key start
LH: loop header
LB: loop body
LE: loop exit
PB: predicated region body
PF: predicated region fallthrough
CT: control target
= control target key end

     0   :  { %8 = vsyncpa [#allocation3], 0  ;;  %s363_s0 = inlined_call_operand.hbm [shape: f32[8,8], index: 0, kind: input, shape index: {}]   ;;  %s364_s1 = inlined_call_operand.hbm [shape: bf16[32,32], index: 1, kind: input, shape index: {}]   ;;  %s365_s2 = inlined_call_operand.hbm [shape: f32[8,32], index: 2, kind: input, shape index: {}]   ;;  %s366_s3 = inlined_call_operand.hbm [shape: f32[8,8], index: 3, kind: output, shape index: {}]  }
   0x1   :  { %9 = vsyncpa [#allocation6], 0  ;;  %s26_s14 = sshll.u32 %s364_s1, 4  ;;  %s27_s14 = int_to_ptr.hbm [resolvable:$true] %s26_s14 }
   0x2   :  { %10 = vsyncpa [#allocation4], 0  ;;  %s319_s15 = smov [#allocation5]   ;;  %s16_s19 = sshll.u32 %s363_s0, 4  ;;  %s17_s19 = int_to_ptr.hbm [resolvable:$true] %s16_s19 }
   0x3   :  { %s28_s16 = sshll.u32 %s319_s15, 4  ;;  %s320_s20 = smov 64   ;;  %s29_s16 = int_to_ptr.vmem [resolvable:$true] %s28_s16 }
   0x4   :  { %s321_s21 = smov 4   ;;  %s322_s22 = smov [#allocation2]  }
   0x5   :  { %34 = dma.hbm_to_vmem [thread:$0]  %s27_s14, 256, %s29_s16, [#allocation6], %s320_s20, %s320_s20, %s321_s21  }
   0x6   :  { %s18_s23 = sshll.u32 %s322_s22, 4  ;;  %s40_s26 = sshll.u32 %s365_s2, 4  ;;  %s19_s23 = int_to_ptr.vmem [resolvable:$true] %s18_s23  ;;  %s41_s26 = int_to_ptr.hbm [resolvable:$true] %s40_s26 }
   0x7   :  { %21 = dma.hbm_to_vmem [thread:$0]  %s17_s19, 128, %s19_s23, [#allocation3]  }
   0x8   :  { %s323_s1 = smov [#allocation7]  }
   0x9   :  { %s42_s27 = sshll.u32 %s323_s1, 4  ;;  %s43_s27 = int_to_ptr.vmem [resolvable:$true] %s42_s27 }
   0xa   :  { %45 = dma.hbm_to_vmem [thread:$0]  %s41_s26, 128, %s43_s27, [#allocation6]  }
   0xb   :  { %313 = dma.done.wait [#allocation3], 128  }
   0xc   :  { %314 = vsyncadd [#allocation3], 4294967168 }
   0xd   :  { %315 = dma.done.wait [#allocation6], 384  }
   0xe   :  { %316 = vsyncadd [#allocation6], 4294966912  ;;  %vm71_vm0 = vcmask 1043456   ;;  %v59_v0 = vld [vmem:[#allocation5] sm:$0xf]  ;;  %v64_v1 = vld [vmem:[#allocation2] sm:$0xff] }
   0xf   :  { %v73_v2 = vsel %vm71_vm0, %v59_v0, 0  ;;  %v65_v3 = vpack.c.bf16 %v64_v1, %v64_v1  ;;  %vm67_vm1 = vcmask 64512   ;;  %v210_v4 = vld [vmem:[#allocation5 + $0x8] sm:$0xff]  ;;  %v209_v5 = vld [vmem:[#allocation5] sm:$0xff]  ;;  %v63_v6 = vld [vmem:[#allocation7] sm:$0xff]  ;;  %vm103_vm2 = vcmask 261120  }
  0x10   :  { %82 = vmatpush.bf16.msra.mxu0 %v73_v2  ;;  %113 = vmatpush.bf16.msra.mxu1 %v210_v4  ;;  %v66_v7 = vperm.slane %v63_v6, 0  ;;  %v90_v13 = vperm.slane %v63_v6, 1  ;;  %v122_v19 = vperm.slane %v63_v6, 2  ;;  %v141_v25 = vperm.slane %v63_v6, 3  ;;  %s324_s0 = smov [#allocation8]   ;;  %s185_s30 = sshll.u32 %s366_s3, 4  ;;  %s186_s30 = int_to_ptr.hbm [resolvable:$true] %s185_s30 }
  0x11   :  { %132 = vmatpush.bf16.msra.mxu2 %v210_v4  ;;  %151 = vmatpush.bf16.msra.mxu3 %v210_v4  ;;  %v160_v31 = vperm.slane %v63_v6, 4  ;;  %s183_s2 = sshll.u32 %s324_s0, 4  ;;  %s184_s2 = int_to_ptr.vmem [resolvable:$true] %s183_s2 }
  0x13   :  { %196 = vmatmul.msk.bf16.vlgmr.msra.gmra.mxu0 %vm67_vm1, %v65_v3 }
  0x14   :  { %170 = vmatpush.bf16.msrb.mxu0 %v210_v4  ;;  %114 = vmatpush.bf16.msra.mxu1 %v209_v5 }
  0x15   :  { %133 = vmatpush.bf16.msra.mxu2 %v209_v5  ;;  %152 = vmatpush.bf16.msra.mxu3 %v209_v5 }
  0x18   :  { %171 = vmatpush.bf16.msrb.mxu0 %v209_v5 }
  0x90   :  { %v84_v8 = vpop.f32.mrf.mxu0 }
  0x91   :  { %v85_v9 = vadd.f32 %v84_v8, %v66_v7 }
  0x93   :  { %v88_v10 = vmax.f32 %v85_v9, 0.0 }
  0x95   :  { %v89_v11 = vpack.c.bf16 %v88_v10, %v88_v10 }
  0x97   :  { %205 = vmatmul.msk.bf16.vlgmr.msra.gmra.mxu1 %vm103_vm2, %v89_v11 }
  0x98   :  { %v86_v12 = vpop.f32.mrf.mxu0 }
 0x114   :  { %v116_v14 = vpop.f32.mrf.mxu1 }
 0x115   :  { %v117_v15 = vadd.f32 %v116_v14, %v90_v13 }
 0x117   :  { %v120_v16 = vmax.f32 %v117_v15, 0.0 }
 0x119   :  { %v121_v17 = vpack.c.bf16 %v120_v16, %v120_v16 }
 0x11b   :  { %206 = vmatmul.msk.bf16.vlgmr.msra.gmra.mxu2 %vm103_vm2, %v121_v17 }
 0x11c   :  { %v118_v18 = vpop.f32.mrf.mxu1 }
 0x19e   :  { %v135_v20 = vpop.f32.mrf.mxu2 }
 0x19f   :  { %v136_v21 = vadd.f32 %v135_v20, %v122_v19 }
 0x1a1   :  { %v139_v22 = vmax.f32 %v136_v21, 0.0 }
 0x1a3   :  { %v140_v23 = vpack.c.bf16 %v139_v22, %v139_v22 }
 0x1a5   :  { %207 = vmatmul.msk.bf16.vlgmr.msra.gmra.mxu3 %vm103_vm2, %v140_v23 }
 0x1a6   :  { %v137_v24 = vpop.f32.mrf.mxu2 }
 0x228   :  { %v154_v26 = vpop.f32.mrf.mxu3 }
 0x229   :  { %v155_v27 = vadd.f32 %v154_v26, %v141_v25 }
 0x22b   :  { %v158_v28 = vmax.f32 %v155_v27, 0.0 }
 0x22d   :  { %v159_v29 = vpack.c.bf16 %v158_v28, %v158_v28 }
 0x22f   :  { %208 = vmatmul.msk.bf16.vlgmr.msrb.gmra.mxu0 %vm103_vm2, %v159_v29 }
 0x230   :  { %v156_v30 = vpop.f32.mrf.mxu3 }
 0x2ac   :  { %v173_v32 = vpop.f32.mrf.mxu0 }
 0x2ad   :  { %v174_v33 = vadd.f32 %v173_v32, %v160_v31 }
 0x2af   :  { %177 = vst.msk [vmem:[#allocation8] sm:$0xff] %vm67_vm1, %v174_v33 }
 0x2b0   :  { %188 = dma.vmem_to_hbm [thread:$0]  %s184_s2, 128, %s186_s30, [#allocation4]  }
 0x2b4   :  { %v175_v34 = vpop.f32.mrf.mxu0 }
 0x2b5   :  { %317 = dma.done.wait [#allocation4], 128  }
 0x2b6   :  { %318 = vsyncadd [#allocation4], 4294967168 }
 0x2b7   :  { %193 = vsyncpa [#allocation3], 1 }
 0x2b8   :  { %194 = vsyncpa [#allocation6], 1 }
 0x2b9   :  { %195 = vsyncpa [#allocation4], 1 }

</bundles_post_ra>
